<compile_context>
chip_gen: v5e
topology: v5e:2x2
jax: 0.10.0
libtpu: 0.0.40
codegen_flags: <defaults>
</compile_context>

<pallas_src>
import functools
import math

import jax
import jax.numpy as jnp
from jax.experimental import pallas as pl
from jax.experimental.pallas import tpu as pltpu


def _bce_sum_kernel(x_ref, y_ref, pw_ref, out_ref, acc_ref, *,
                    total_elems, tb, w, blocks_per_core, full_blocks,
                    needs_mask):
    c = pl.program_id(0)                 # core (parallel) axis
    i = pl.program_id(1)                 # row-block (reduction) axis
    bg = c * blocks_per_core + i         # global row-block index

    @pl.when(i == 0)
    def _():
        acc_ref[...] = jnp.zeros_like(acc_ref)

    def elementwise_loss():
        x = x_ref[...].astype(jnp.float32)      # (tb, W)
        y = y_ref[...].astype(jnp.float32)      # (tb, W)
        pw = pw_ref[...].astype(jnp.float32)    # (1, W), broadcasts over rows
        # PyTorch BCEWithLogitsLoss (numerically stable), per element:
        #   lw = 1 + (pos_weight - 1) * y
        #   l  = (1 - y) * x + lw * (log1p(exp(-|x|)) + max(-x, 0))
        lw = 1.0 + (pw - 1.0) * y
        return (1.0 - y) * x + lw * (
            jnp.log1p(jnp.exp(-jnp.abs(x))) + jnp.maximum(-x, 0.0))

    def fold(loss):
        # Fold tb rows into the accumulator rows (pure VPU adds; the reshape
        # only splits the sublane-major dim at the sublane tile of 8).
        if tb % 8 == 0 and tb > 8:
            return jnp.sum(loss.reshape(tb // 8, 8, w), axis=0)
        return loss

    if needs_mask:
        # Steady state: full blocks, no masking work at all.
        @pl.when(bg < full_blocks)
        def _():
            acc_ref[...] += fold(elementwise_loss())

        # Ragged last block and dead blocks (bg >= number of real blocks):
        # zero everything at/after the remaining-element count.
        @pl.when(bg >= full_blocks)
        def _():
            loss = elementwise_loss()
            rem = total_elems - bg * (tb * w)   # scalar; <= 0 for dead blocks
            idx = (jax.lax.broadcasted_iota(jnp.int32, (tb, w), 0) * w
                   + jax.lax.broadcasted_iota(jnp.int32, (tb, w), 1))
            acc_ref[...] += fold(jnp.where(idx < rem, loss, 0.0))
    else:
        acc_ref[...] += fold(elementwise_loss())

    @pl.when(i == blocks_per_core - 1)
    def _():
        # Lane-dense per-core partial-sum slab; wrapper does the final sum.
        out_ref[0] = acc_ref[...]


def _choose_row_tile(m, w, itemsize, override=None):
    """Rows per block: ~2 MiB per input block, multiple of 8, in [8, 4096]."""
    if override is not None:
        tb = max(1, override)            # test hook; use a multiple of 8
    else:
        target_bytes = 2 << 20           # v5e-safe with double buffering
        tb = (target_bytes // max(1, w * itemsize) // 8) * 8
        tb = max(8, min(4096, tb))
    return m if m <= tb else tb


def local_loss_pallas(logits, labels, pos_weight, *, _row_tile_override=None):
    """Mean pos-weighted BCE-with-logits over all elements of (N, C)."""
    N, C = logits.shape
    T = N * C
    itemsize_x = jnp.dtype(logits.dtype).itemsize
    itemsize_y = jnp.dtype(labels.dtype).itemsize

    # Lane-dense row width: multiple of both C (so pos_weight tiles exactly)
    # and 128 (so every vreg lane is useful).
    if C % 128 == 0:
        r, W = 1, C
    else:
        W = C * 128 // math.gcd(C, 128)          # lcm(C, 128)
        r = W // C
        if W * itemsize_x * 8 > (4 << 20):       # absurdly wide row -> fall back
            r, W = 1, C

    M = -(-T // W)                               # repacked rows
    T_pad = M * W

    TB = _choose_row_tile(M, W, itemsize_x, _row_tile_override)
    NC = -(-M // TB)                             # real row-blocks
    NCORES = 2                                   # v7x has 2 TCs; neutral elsewhere
    S = -(-NC // NCORES)                         # row-blocks per core

    # Flatten (free for contiguous arrays); pad only the ragged flat tail.
    flat_x = logits.reshape(-1)
    flat_y = labels.reshape(-1)
    if T_pad != T:
        flat_x = jnp.pad(flat_x, (0, T_pad - T))
        flat_y = jnp.pad(flat_y, (0, T_pad - T))
    x2 = flat_x.reshape(M, W)
    y2 = flat_y.reshape(M, W)

    posw2d = jnp.tile(pos_weight.reshape(1, C).astype(jnp.float32), (1, r))  # (1, W)

    acc_rows = 8 if TB % 8 == 0 else TB
    no_elem_pad = (T == NC * TB * W)
    full_blocks = NC if no_elem_pad else NC - 1
    needs_mask = (not no_elem_pad) or (NCORES * S != NC)

    kernel = functools.partial(
        _bce_sum_kernel, total_elems=T, tb=TB, w=W, blocks_per_core=S,
        full_blocks=full_blocks, needs_mask=needs_mask)

    def in_map(c, i):
        # Clamp dead blocks (only exist when NCORES*S > NC) to the last real
        # block; their contribution is fully masked in-kernel.
        return (jnp.minimum(c * S + i, NC - 1), 0)

    # VMEM budget: 2 inputs x 2 buffers x block + out slab + acc + posw.
    need = (2 * TB * W * (itemsize_x + itemsize_y)
            + 3 * acc_rows * W * 4 + 2 * W * 4)
    vmem_limit = int(min(48 << 20, max(32 << 20, 2 * need)))

    partials = pl.pallas_call(
        kernel,
        out_shape=jax.ShapeDtypeStruct((NCORES, acc_rows, W), jnp.float32),
        grid_spec=pltpu.PrefetchScalarGridSpec(
            num_scalar_prefetch=0,
            grid=(NCORES, S),
            in_specs=[
                pl.BlockSpec((TB, W), in_map),            # logits (repacked)
                pl.BlockSpec((TB, W), in_map),            # labels (repacked)
                pl.BlockSpec((1, W), lambda c, i: (0, 0)),  # pos_weight (resident)
            ],
            out_specs=pl.BlockSpec((1, acc_rows, W), lambda c, i: (c, 0, 0)),
            scratch_shapes=[pltpu.VMEM((acc_rows, W), jnp.float32)],
        ),
        compiler_params=pltpu.CompilerParams(
            dimension_semantics=("parallel", "arbitrary"),
            vmem_limit_bytes=vmem_limit),
    )(x2, y2, posw2d)

    return (jnp.sum(partials) / T).astype(jnp.float32)


def make_pos_weight(num_classes, bce_pos_weight):
    # Deterministic parameter construction, mirroring local_loss.__init__:
    #   m = (pw - 1)/(L - 1), c = 1 - m, level i (1-indexed) -> weight i*m + c
    m = (bce_pos_weight - 1.0) / (len(num_classes) - 1)
    c = 1.0 - m
    ws = [jnp.ones((j,), jnp.float32) * (i * m + c)
          for i, j in enumerate(num_classes, 1)]
    return jnp.concatenate(ws)


def _reference(logits, labels, pos_weight):
    # Independent pure-JAX reference via log-sigmoid (mean reduction).
    x = logits.astype(jnp.float32)
    y = labels.astype(jnp.float32)
    pw = pos_weight[None, :].astype(jnp.float32)
    loss = -(pw * y * jax.nn.log_sigmoid(x) + (1.0 - y) * jax.nn.log_sigmoid(-x))
    return jnp.mean(loss)


if __name__ == "__main__":
    num_classes = [8, 16, 24]        # hierarchical level sizes -> C = 48
    bce_pos_weight = 5.0
    C = sum(num_classes)
    pos_weight = make_pos_weight(num_classes, bce_pos_weight)

    key = jax.random.PRNGKey(0)
    ok = True
    # (N, row-tile override): aligned/ragged row counts; the last case forces
    # a multi-block grid so the steady/masked split and 2-core partials are
    # exercised even at small shapes.
    for N, tile_override in ((8, None), (10, None), (256, None), (250, 8)):
        key, k1, k2 = jax.random.split(key, 3)
        logits = jax.random.normal(k1, (N, C), jnp.float32)
        labels = (jax.random.uniform(k2, (N, C)) > 0.5).astype(jnp.float32)

        out = local_loss_pallas(logits, labels, pos_weight,
                                _row_tile_override=tile_override)
        jax.block_until_ready(out)

        ref = _reference(logits, labels, pos_weight)
        if not jnp.allclose(out, ref, rtol=1e-5, atol=1e-5):
            ok = False
            print("MISMATCH at N=%d: kernel=%r ref=%r" % (N, out, ref))

    if ok:
        print("KERNEL_OK")
</pallas_src>

<mosaic_0001>
module attributes {stable_mosaic.version = 11 : i64} {
  func.func @_bce_sum_kernel(%arg0: i32, %arg1: i32, %arg2: memref<1x384xf32, #tpu.memory_space<vmem>>, %arg3: memref<1x384xf32, #tpu.memory_space<vmem>>, %arg4: memref<1x384xf32, #tpu.memory_space<vmem>>, %arg5: memref<1x1x384xf32, #tpu.memory_space<vmem>>, %arg6: memref<1x384xf32, #tpu.memory_space<vmem>>) attributes {dimension_semantics = [#tpu.dimension_semantics<parallel>, #tpu.dimension_semantics<arbitrary>], iteration_bounds = array<i64: 2, 1>, scalar_prefetch = 0 : i64, scratch_operands = 1 : i64, tpu.core_type = #tpu.core_type<tc>, window_params = [{transform_indices = @transform_0, window_bounds = array<i64: 1, 384>}, {transform_indices = @transform_1, window_bounds = array<i64: 1, 384>}, {pipeline_mode = #tpu.pipeline_mode<synchronous>, transform_indices = @transform_2, window_bounds = array<i64: 1, 384>}, {transform_indices = @transform_3, window_bounds = array<i64: 1, 1, 384>}]} {
    %c1_i32 = arith.constant 1 : i32
    %0 = arith.muli %arg0, %c1_i32 : i32
    %1 = arith.addi %0, %arg1 : i32
    %c0_i32 = arith.constant 0 : i32
    %2 = arith.cmpi eq, %arg1, %c0_i32 : i32
    %3 = arith.extui %2 : i1 to i32
    %c0_i32_0 = arith.constant 0 : i32
    %4 = arith.cmpi ne, %3, %c0_i32_0 : i32
    scf.if %4 {
      %cst = arith.constant 0.000000e+00 : f32
      %14 = vector.broadcast %cst : f32 to vector<1x384xf32>
      %c0 = arith.constant 0 : index
      %c0_7 = arith.constant 0 : index
      %15 = vector.load %arg6[%c0, %c0_7] : memref<1x384xf32, #tpu.memory_space<vmem>>, vector<1x384xf32>
      tpu.vector_store %arg6[%c0, %c0_7], %14 {strides = array<i32>} : memref<1x384xf32, #tpu.memory_space<vmem>>, vector<1x384xf32>,
    } else {
    }
    %c1_i32_1 = arith.constant 1 : i32
    %5 = arith.cmpi slt, %1, %c1_i32_1 : i32
    %6 = arith.extui %5 : i1 to i32
    %c0_i32_2 = arith.constant 0 : i32
    %7 = arith.cmpi ne, %6, %c0_i32_2 : i32
    scf.if %7 {
      %c0 = arith.constant 0 : index
      %c0_7 = arith.constant 0 : index
      %14 = vector.load %arg6[%c0, %c0_7] : memref<1x384xf32, #tpu.memory_space<vmem>>, vector<1x384xf32>
      %c0_8 = arith.constant 0 : index
      %c0_9 = arith.constant 0 : index
      %15 = vector.load %arg2[%c0_8, %c0_9] : memref<1x384xf32, #tpu.memory_space<vmem>>, vector<1x384xf32>
      %c0_10 = arith.constant 0 : index
      %c0_11 = arith.constant 0 : index
      %16 = vector.load %arg3[%c0_10, %c0_11] : memref<1x384xf32, #tpu.memory_space<vmem>>, vector<1x384xf32>
      %c0_12 = arith.constant 0 : index
      %c0_13 = arith.constant 0 : index
      %17 = vector.load %arg4[%c0_12, %c0_13] : memref<1x384xf32, #tpu.memory_space<vmem>>, vector<1x384xf32>
      %cst = arith.constant 1.000000e+00 : f32
      %18 = vector.broadcast %cst : f32 to vector<1x384xf32>
      %19 = arith.subf %17, %18 : vector<1x384xf32>
      %20 = arith.mulf %19, %16 : vector<1x384xf32>
      %cst_14 = arith.constant 1.000000e+00 : f32
      %21 = vector.broadcast %cst_14 : f32 to vector<1x384xf32>
      %22 = arith.addf %21, %20 : vector<1x384xf32>
      %cst_15 = arith.constant 1.000000e+00 : f32
      %23 = vector.broadcast %cst_15 : f32 to vector<1x384xf32>
      %24 = arith.subf %23, %16 : vector<1x384xf32>
      %25 = arith.mulf %24, %15 : vector<1x384xf32>
      %26 = math.absf %15 : vector<1x384xf32>
      %cst_16 = arith.constant 0.000000e+00 : f32
      %27 = vector.broadcast %cst_16 : f32 to vector<1x384xf32>
      %28 = arith.subf %27, %26 : vector<1x384xf32>
      %29 = math.exp %28 : vector<1x384xf32>
      %30 = math.log1p %29 : vector<1x384xf32>
      %cst_17 = arith.constant 0.000000e+00 : f32
      %31 = vector.broadcast %cst_17 : f32 to vector<1x384xf32>
      %32 = arith.subf %31, %15 : vector<1x384xf32>
      %cst_18 = arith.constant 0.000000e+00 : f32
      %33 = vector.broadcast %cst_18 : f32 to vector<1x384xf32>
      %34 = arith.maximumf %32, %33 : vector<1x384xf32>
      %35 = arith.addf %30, %34 : vector<1x384xf32>
      %36 = arith.mulf %22, %35 : vector<1x384xf32>
      %37 = arith.addf %25, %36 : vector<1x384xf32>
      %38 = arith.addf %14, %37 : vector<1x384xf32>
      %c0_19 = arith.constant 0 : index
      %c0_20 = arith.constant 0 : index
      %39 = vector.load %arg6[%c0_19, %c0_20] : memref<1x384xf32, #tpu.memory_space<vmem>>, vector<1x384xf32>
      tpu.vector_store %arg6[%c0_19, %c0_20], %38 {strides = array<i32>} : memref<1x384xf32, #tpu.memory_space<vmem>>, vector<1x384xf32>,
    } else {
    }
    %c1_i32_3 = arith.constant 1 : i32
    %8 = arith.cmpi sge, %1, %c1_i32_3 : i32
    %9 = arith.extui %8 : i1 to i32
    %c0_i32_4 = arith.constant 0 : i32
    %10 = arith.cmpi ne, %9, %c0_i32_4 : i32
    scf.if %10 {
      %c0 = arith.constant 0 : index
      %c0_7 = arith.constant 0 : index
      %14 = vector.load %arg2[%c0, %c0_7] : memref<1x384xf32, #tpu.memory_space<vmem>>, vector<1x384xf32>
      %c0_8 = arith.constant 0 : index
      %c0_9 = arith.constant 0 : index
      %15 = vector.load %arg3[%c0_8, %c0_9] : memref<1x384xf32, #tpu.memory_space<vmem>>, vector<1x384xf32>
      %c0_10 = arith.constant 0 : index
      %c0_11 = arith.constant 0 : index
      %16 = vector.load %arg4[%c0_10, %c0_11] : memref<1x384xf32, #tpu.memory_space<vmem>>, vector<1x384xf32>
      %cst = arith.constant 1.000000e+00 : f32
      %17 = vector.broadcast %cst : f32 to vector<1x384xf32>
      %18 = arith.subf %16, %17 : vector<1x384xf32>
      %19 = arith.mulf %18, %15 : vector<1x384xf32>
      %cst_12 = arith.constant 1.000000e+00 : f32
      %20 = vector.broadcast %cst_12 : f32 to vector<1x384xf32>
      %21 = arith.addf %20, %19 : vector<1x384xf32>
      %cst_13 = arith.constant 1.000000e+00 : f32
      %22 = vector.broadcast %cst_13 : f32 to vector<1x384xf32>
      %23 = arith.subf %22, %15 : vector<1x384xf32>
      %24 = arith.mulf %23, %14 : vector<1x384xf32>
      %25 = math.absf %14 : vector<1x384xf32>
      %cst_14 = arith.constant 0.000000e+00 : f32
      %26 = vector.broadcast %cst_14 : f32 to vector<1x384xf32>
      %27 = arith.subf %26, %25 : vector<1x384xf32>
      %28 = math.exp %27 : vector<1x384xf32>
      %29 = math.log1p %28 : vector<1x384xf32>
      %cst_15 = arith.constant 0.000000e+00 : f32
      %30 = vector.broadcast %cst_15 : f32 to vector<1x384xf32>
      %31 = arith.subf %30, %14 : vector<1x384xf32>
      %cst_16 = arith.constant 0.000000e+00 : f32
      %32 = vector.broadcast %cst_16 : f32 to vector<1x384xf32>
      %33 = arith.maximumf %31, %32 : vector<1x384xf32>
      %34 = arith.addf %29, %33 : vector<1x384xf32>
      %35 = arith.mulf %21, %34 : vector<1x384xf32>
      %36 = arith.addf %24, %35 : vector<1x384xf32>
      %c384_i32 = arith.constant 384 : i32
      %37 = arith.muli %1, %c384_i32 : i32
      %c384_i32_17 = arith.constant 384 : i32
      %38 = arith.subi %c384_i32_17, %37 : i32
      %39 = tpu.iota {dimensions = array<i32: 0>} : vector<1x384xi32>
      %c384_i32_18 = arith.constant 384 : i32
      %40 = vector.broadcast %c384_i32_18 : i32 to vector<1x384xi32>
      %41 = arith.muli %39, %40 : vector<1x384xi32>
      %42 = tpu.iota {dimensions = array<i32: 1>} : vector<1x384xi32>
      %43 = arith.addi %41, %42 : vector<1x384xi32>
      %c0_19 = arith.constant 0 : index
      %c0_20 = arith.constant 0 : index
      %44 = vector.load %arg6[%c0_19, %c0_20] : memref<1x384xf32, #tpu.memory_space<vmem>>, vector<1x384xf32>
      %45 = vector.broadcast %38 : i32 to vector<1x384xi32>
      %46 = arith.cmpi slt, %43, %45 : vector<1x384xi32>
      %cst_21 = arith.constant 0.000000e+00 : f32
      %47 = vector.broadcast %cst_21 : f32 to vector<1x384xf32>
      %48 = arith.select %46, %36, %47 : vector<1x384xi1>, vector<1x384xf32>
      %49 = arith.addf %44, %48 : vector<1x384xf32>
      %c0_22 = arith.constant 0 : index
      %c0_23 = arith.constant 0 : index
      %50 = vector.load %arg6[%c0_22, %c0_23] : memref<1x384xf32, #tpu.memory_space<vmem>>, vector<1x384xf32>
      tpu.vector_store %arg6[%c0_22, %c0_23], %49 {strides = array<i32>} : memref<1x384xf32, #tpu.memory_space<vmem>>, vector<1x384xf32>,
    } else {
    }
    %c0_i32_5 = arith.constant 0 : i32
    %11 = arith.cmpi eq, %arg1, %c0_i32_5 : i32
    %12 = arith.extui %11 : i1 to i32
    %c0_i32_6 = arith.constant 0 : i32
    %13 = arith.cmpi ne, %12, %c0_i32_6 : i32
    scf.if %13 {
      %c0 = arith.constant 0 : index
      %c0_7 = arith.constant 0 : index
      %14 = vector.load %arg6[%c0, %c0_7] : memref<1x384xf32, #tpu.memory_space<vmem>>, vector<1x384xf32>
      %c0_8 = arith.constant 0 : index
      %c0_9 = arith.constant 0 : index
      %c0_10 = arith.constant 0 : index
      %15 = vector.load %arg5[%c0_8, %c0_9, %c0_10] : memref<1x1x384xf32, #tpu.memory_space<vmem>>, vector<1x1x384xf32>
      %16 = vector.shape_cast %15 : vector<1x1x384xf32> to vector<1x384xf32>
      %17 = vector.shape_cast %14 : vector<1x384xf32> to vector<1x1x384xf32>
      tpu.vector_store %arg5[%c0_8, %c0_9, %c0_10], %17 {strides = array<i32>} : memref<1x1x384xf32, #tpu.memory_space<vmem>>, vector<1x1x384xf32>,
    } else {
    }
    return
  }
  func.func @transform_0(%arg0: i32, %arg1: i32) -> (i32, i32) {
    %c1_i32 = arith.constant 1 : i32
    %0 = arith.muli %arg0, %c1_i32 : i32
    %1 = arith.addi %0, %arg1 : i32
    %c0_i32 = arith.constant 0 : i32
    %2 = arith.minsi %1, %c0_i32 : i32
    %c0_i32_0 = arith.constant 0 : i32
    %c0_i32_1 = arith.constant 0 : i32
    return %2, %c0_i32_0 : i32, i32
  }
  func.func @transform_1(%arg0: i32, %arg1: i32) -> (i32, i32) {
    %c1_i32 = arith.constant 1 : i32
    %0 = arith.muli %arg0, %c1_i32 : i32
    %1 = arith.addi %0, %arg1 : i32
    %c0_i32 = arith.constant 0 : i32
    %2 = arith.minsi %1, %c0_i32 : i32
    %c0_i32_0 = arith.constant 0 : i32
    %c0_i32_1 = arith.constant 0 : i32
    return %2, %c0_i32_0 : i32, i32
  }
  func.func @transform_2(%arg0: i32, %arg1: i32) -> (i32, i32) {
    %c0_i32 = arith.constant 0 : i32
    %c0_i32_0 = arith.constant 0 : i32
    %c0_i32_1 = arith.constant 0 : i32
    return %c0_i32, %c0_i32_0 : i32, i32
  }
  func.func @transform_3(%arg0: i32, %arg1: i32) -> (i32, i32, i32) {
    %c0_i32 = arith.constant 0 : i32
    %c0_i32_0 = arith.constant 0 : i32
    %c0_i32_1 = arith.constant 0 : i32
    return %arg0, %c0_i32, %c0_i32_0 : i32, i32, i32
  }
}

</mosaic_0001>

<bundles_post_ra>
// kernel: tpu_custom_call.1
= control target key start
LH: loop header
LB: loop body
LE: loop exit
PB: predicated region body
PF: predicated region fallthrough
CT: control target
= control target key end

     0   :  { %s1107_s0 = inlined_call_operand.hbm [shape: f32[1,384], index: 0, kind: input, shape index: {}]   ;;  %s1108_s1 = inlined_call_operand.hbm [shape: f32[1,384], index: 1, kind: input, shape index: {}]   ;;  %s1109_s2 = inlined_call_operand.hbm [shape: f32[1,384], index: 2, kind: input, shape index: {}]   ;;  %s1110_s3 = inlined_call_operand.hbm [shape: f32[2,1,384], index: 3, kind: output, shape index: {}]  }
   0x1   :  { %1112 = sst [smem:[#allocation15_spill]] %s1109_s2 }
   0x2   :  { %8 = vsyncpa [#allocation4], 0 }
   0x3   :  { %10 = vsyncpa [#allocation4 + $0x1], 0 }
   0x4   :  { %11 = vsyncpa [#allocation7], 0 }
   0x5   :  { %13 = vsyncpa [#allocation7 + $0x1], 0 }
   0x6   :  { %14 = vsyncpa [#allocation5], 0 }
   0x7   :  { %16 = vsyncpa [#allocation5 + $0x1], 0  ;;  %s890_s12 = smov 0   ;;  %s892_s13 = smov 0  }
   0x8   :  { %s894_s14 = smov 0   ;;  %s896_s15 = smov 0  }
   0x9   :  { %s898_s16 = smov 0   ;;  %s900_s17 = smov 0  }
   0xa   :  { %s902_s18 = smov 0   ;;  %s904_s19 = smov 0  }
   0xb LB: > { %s929_s20 = sadd.s32 4294967295, %s864_s19   ;;  %s533_s21 = sadd.s32 4294967294, %s864_s19   ;;  %s864_s19 = sphi %s904_s19, %s22_s19   ;;  %s860_s18 = sphi %s902_s18, %s1129_s18   ;;  %s856_s17 = sphi %s900_s17, %s1128_s17   ;;  %s852_s16 = sphi %s898_s16, %s1097_s16   ;;  %s848_s15 = sphi %s896_s15, %s1127_s15   ;;  %s844_s14 = sphi %s894_s14, %s1126_s14   ;;  %s840_s13 = sphi %s892_s13, %s1125_s13   ;;  %s836_s12 = sphi %s890_s12, %s1124_s12  }
   0xc   : > { %p60_p0 = scmp.ne.s32.totalorder %s852_s16, %s848_s15  ;;  %p61_p1 = scmp.eq.s32.totalorder %s929_s20, 0 }
   0xd   : > { %s126_s22 = sadd.s32 1, %s844_s14  ;;  %p136_p2 = scmp.ne.s32.totalorder %s844_s14, %s840_s13 }
   0xe   : > { %p939_p3 = por %p61_p1, %p60_p0  ;;  %p137_p4 = scmp.eq.s32.totalorder %s929_s20, 1 }
   0xf   : > { %p142_p5 = scmp.ne.s32.totalorder %s840_s13, %s836_s12  ;;  %p143_p6 = scmp.eq.s32.totalorder %s533_s21, 1 }
  0x10   : > { %p946_p7 = por %p137_p4, %p136_p2  ;;  %p534_p8 = scmp.ge.s32.totalorder %s864_s19, 1 }
  0x11   : > { %p951_p9 = por %p143_p6, %p142_p5  ;;  %p150_p10 = scmp.lt.s32.totalorder %s864_s19, 3 }
  0x12   : > { %s1116_s2 = sld [smem:[#allocation15_spill]]  ;;  %s866_s30 = smov [#allocation8]  }
  0x13   : > { %p959_p11 = pnand %p534_p8, %p150_p10  ;;  %s164_s4 = sshll.u32 %s866_s30, 4  ;;  %s165_s4 = int_to_ptr.vmem [resolvable:$true] %s164_s4 }
  0x14   : > { %s34_s5 = sadd.s32 1, %s860_s18  ;;  %p833_p4 = scmp.ne.s32.totalorder %s852_s16, 0 }
  0x15   : > { %p562_p13 = pneg %p959_p11  ;;  %p36_p2 = scmp.ge.s32.totalorder %s34_s5, 2 }
  0x16   : > { %p55_p5 = scmp.eq.s32.totalorder %s864_s19, 0  ;;  %p578_p6 = scmp.lt.s32.totalorder %s864_s19, 2 }
  0x17   : > { %p563_p0 = pnand %p562_p13, %p61_p1  ;;  %s1131_s5 = smov (%p36_p2, %s34_s5), 0 }
  0x18   : > { %s162_s28 = sshll.u32 %s1116_s2, 4  ;;  %1118 = sst [smem:[#allocation14_spill]] %s1131_s5  ;;  %s163_s28 = int_to_ptr.hbm [resolvable:$true] %s162_s28 }
  0x19   : > { %565 = dma.hbm_to_vmem [thread:$0]  (!%p563_p0), %s163_s28, 48, %s165_s4, [#allocation7]  }
  0x1a   : > { %s123_s6 = ssub.s32 %s860_s18, %s1131_s5  ;;  %p56_p8 = por %p833_p4, %p55_p5 }
  0x1b   : > { %p124_p10 = scmp.eq.s32.totalorder %s123_s6, 0  ;;  %s197_s9 = sand.u32 1, %s864_s19  }
  0x1c   : > { %p981_p12 = pnand %p578_p6, %p56_p8  ;;  %s867_s10 = smov [#allocation3]  }
  0x1d   : > { %s979_s7 = scalar_select %p124_p10, %s844_s14, %s126_s22  }
  0x1e   : > { %s190_s11 = sshll.u32 %s867_s10, 4  ;;  %s188_s26 = sshll.u32 %s1107_s0, 4  ;;  %s191_s11 = int_to_ptr.vmem [resolvable:$true] %s190_s11  ;;  %s189_s26 = int_to_ptr.hbm [resolvable:$true] %s188_s26 }
  0x1f   : > { %s693_s27 = sshra.s32 %s189_s26, 4  ;;  %p697_p0 = pneg %p981_p12  ;;  %s694_s27 = int_to_ptr.hbm [resolvable:$true] %s693_s27 }
  0x20   : > { %s695_s28 = scalar_lea.hbm %s694_s27, 3  ;;  %s700_s4 = scalar_lea.hbm %s1107_s0, 3 }
  0x21   : > { %p696_p13 = scmp.ne.s32.totalorder %s694_s27, %s695_s28  ;;  %p702_p5 = scmp.lt.s32.totalorder %s700_s4, %s695_s28 }
  0x23   : > { %p698_p2 = pnand %p697_p0, %p696_p13 }
  0x25   : > { %p699_p4 = pneg %p698_p2 }
  0x27   : > { %p704_p6 = pnand %p702_p5, %p699_p4 }
  0x29   : > { %707 = shalt.err (!%p704_p6)
}
  0x2a   : > { %569 = dma.hbm_to_vmem [thread:$0]  (!%p981_p12), %s189_s26, 48, %s191_s11, [#allocation4]  }
  0x2b   : > { %s210_s15 = sshll.u32 %s1108_s1, 4  ;;  %s868_s21 = smov [#allocation6]   ;;  %s211_s15 = int_to_ptr.hbm [resolvable:$true] %s210_s15 }
  0x2c   : > { %s212_s27 = sshll.u32 %s868_s21, 4  ;;  %s198_s2 = scalar_lea.sflag [#allocation7], %s197_s9  ;;  %s213_s27 = int_to_ptr.vmem [resolvable:$true] %s212_s27 }
  0x2d   : > { %s723_s5 = sshra.s32 %s211_s15, 4  ;;  %s730_s11 = scalar_lea.hbm %s1108_s1, 3  ;;  %s724_s5 = int_to_ptr.hbm [resolvable:$true] %s723_s5 }
  0x2e   : > { %s725_s22 = scalar_lea.hbm %s724_s5, 3 }
  0x2f   : > { %p726_p8 = scmp.ne.s32.totalorder %s724_s5, %s725_s22  ;;  %p732_p2 = scmp.lt.s32.totalorder %s730_s11, %s725_s22 }
  0x31   : > { %p728_p10 = pnand %p726_p8, %p697_p0 }
  0x33   : > { %p729_p13 = pneg %p728_p10 }
  0x35   : > { %p734_p4 = pnand %p732_p2, %p729_p13 }
  0x37   : > { %737 = shalt.err (!%p734_p4)
}
  0x38   : > { %572 = dma.hbm_to_vmem [thread:$0]  (!%p981_p12), %s211_s15, 48, %s213_s27, %s198_s2  }
  0x39   : > { %221 = sbr.rel (%p959_p11) target bundleno = 175 (0xaf), region = 32  ;;  %s223_s5 = sand.u32 (!%p959_p11), 1, %s852_s16  }
  0x3a   : > { %s1013_s9 = smul.u32 (!%p959_p11), 3, %s223_s5  ;;  %s224_s26 = scalar_lea.sflag (!%p959_p11), [#allocation4], %s223_s5 }
  0x3c   : > { %s227_s4 = scalar_lea.vmem (!%p959_p11), [#allocation3], %s1013_s9 }
  0x3e   : > { %818 = dma.done.wait (%p939_p3), %s224_s26, 48  }
  0x3f   : > { %820 = vsyncadd (%p939_p3), %s224_s26, 4294967248  ;;  %s233_s2 = sand.u32 1, %s929_s20   ;;  %s237_s29 = scalar_lea.vmem [#allocation6], %s1013_s9 }
  0x40   : > { %s234_s8 = scalar_lea.sflag [#allocation7], %s233_s2 }
  0x41   : > { %822 = dma.done.wait (%p939_p3), %s234_s8, 48  }
  0x42   : > { %824 = vsyncadd (%p939_p3), %s234_s8, 4294967248 }
  0x43   : > { %826 = dma.done.wait (%p61_p1), [#allocation7], 48  }
  0x44   : > { %828 = vsyncadd (%p61_p1), [#allocation7], 4294967248  ;;  %s268_s6 = sand.u32 1, %s840_s13   ;;  %v282_v0 = vlaneseq  ;;  %v869_v2 = vmov 0.0   ;;  %p539_p3 = scmp.ge.s32.totalorder %s856_s17, 1 }
  0x45   : > { %s1033_s10 = smul.u32 3, %s268_s6 }
  0x46   : > { %vm1035_vm0 = vcmp.lt.s32.totalorder %v282_v0, 384  ;;  %290 = sbr.rel (%p539_p3) target bundleno = 110 (0x6e), region = 52 }
  0x47   : > { %286 = vst.msk [vmem:[#allocation2] sm:$0x7] %vm1035_vm0, %v869_v2  ;;  %s270_s23 = scalar_lea.vmem [#allocation9], %s1033_s10 }
  0x4b   : > { %v292_v3 = vld [vmem:[%s227_s4] sm:$0x7]  ;;  %v294_v8 = vld [vmem:[#allocation8] sm:$0x7]  ;;  %v293_v12 = vld [vmem:[%s237_s29] sm:$0x7] }
  0x4c   : > { %v300_v4 = vand.u32 2147483647, %v292_v3  ;;  %v540_v11 = vadd.f32 -1.0, %v294_v8  ;;  %v313_v15 = vsub.f32 0.0, %v292_v3  ;;  %v298_v19 = vsub.f32 1.0, %v293_v12 }
  0x4e   : > { %v301_v5 = vsub.f32 0.0, %v300_v4  ;;  %v296_v16 = vmul.f32 %v540_v11, %v293_v12  ;;  %v314_v20 = vmax.f32 %v313_v15, 0.0  ;;  %v299_v24 = vmul.f32 %v298_v19, %v292_v3  ;;  %v291_v27 = vld [vmem:[#allocation2] sm:$0x7] }
  0x50   : > { %v302_v6 = vmul.f32 1.442695, %v301_v5  ;;  %v297_v22 = vadd.f32 1.0, %v296_v16 }
  0x52   : > { %655 = vpow2.f32 %v302_v6 }
  0x58   : > { %v656_v7 = vpop.eup %655 }
  0x59   : > { %v304_v9 = vadd.f32 1.0, %v656_v7  ;;  %v307_v10 = vmul.f32 -0.5, %v656_v7  ;;  %v310_v14 = vand.u32 2147483647, %v656_v7 }
  0x5b   : > { %657 = vlog2.f32 %v304_v9  ;;  %v308_v13 = vadd.f32 1.0, %v307_v10  ;;  %vm311_vm1 = vcmp.lt.f32.partialorder %v310_v14, 0.0004427343 }
  0x5d   : > { %v309_v17 = vmul.f32 %v656_v7, %v308_v13 }
  0x61   : > { %v658_v18 = vpop.eup %657 }
  0x62   : > { %v306_v21 = vmul.f32 0.6931472, %v658_v18 }
  0x64   : > { %v312_v23 = vsel %vm311_vm1, %v309_v17, %v306_v21 }
  0x65   : > { %v315_v25 = vadd.f32 %v314_v20, %v312_v23 }
  0x67   : > { %v316_v26 = vmul.f32 %v315_v25, %v297_v22 }
  0x69   : > { %v317_v28 = vadd.f32 %v316_v26, %v299_v24 }
  0x6b   : > { %v318_v29 = vadd.f32 %v317_v28, %v291_v27 }
  0x6d   : > { %323 = vst.msk [vmem:[#allocation2] sm:$0x7] %vm1035_vm0, %v318_v29 }
  0x6e PF: > { %p541_p1 = scmp.lt.s32.totalorder %s856_s17, 1 }
  0x6f   : > { %s354_s20 = smul.u32 (!%p541_p1), 384, %s856_s17 }
  0x70   : > { %327 = sbr.rel (%p541_p1) target bundleno = 159 (0x9f), region = 56 }
  0x71   : > { %s355_s15 = ssub.s32 (!%p541_p1), 384, %s354_s20 }
  0x75   : > { %v328_v30 = vld [vmem:[%s227_s4] sm:$0x7]  ;;  %v330_v35 = vld [vmem:[#allocation8] sm:$0x7]  ;;  %v329_v39 = vld [vmem:[%s237_s29] sm:$0x7]  ;;  %v367_v62 = vstv %s355_s15 }
  0x76   : > { %v336_v31 = vand.u32 2147483647, %v328_v30  ;;  %v542_v38 = vadd.f32 -1.0, %v330_v35  ;;  %v349_v42 = vsub.f32 0.0, %v328_v30  ;;  %v357_v43 = vshrl.u32 %v282_v0, 7 }
  0x77   : > { %v360_v44 = vand.u32 127, %v282_v0  ;;  %v334_v48 = vsub.f32 1.0, %v329_v39  ;;  %vm386_vm6 = vcmask 1040384   ;;  %vm388_vm7 = vcmask 1041408   ;;  %v366_v9 = vld [vmem:[#allocation2] sm:$0x7] }
  0x78   : > { %v337_v32 = vsub.f32 0.0, %v336_v31  ;;  %v332_v45 = vmul.f32 %v542_v38, %v329_v39  ;;  %v350_v49 = vmax.f32 %v349_v42, 0.0  ;;  %v358_v51 = vmul.u32 384, %v357_v43 }
  0x79   : > { %v361_v52 = vadd.s32 128, %v360_v44  ;;  %v362_v53 = vadd.s32 256, %v360_v44  ;;  %v335_v56 = vmul.f32 %v334_v48, %v328_v30 }
  0x7a   : > { %v338_v33 = vmul.f32 1.442695, %v337_v32  ;;  %v333_v54 = vadd.f32 1.0, %v332_v45  ;;  %v363_v58 = vadd.s32 %v360_v44, %v358_v51 }
  0x7b   : > { %v364_v59 = vadd.s32 %v361_v52, %v358_v51  ;;  %v365_v60 = vadd.s32 %v362_v53, %v358_v51 }
  0x7c   : > { %659 = vpow2.f32 %v338_v33  ;;  %vm368_vm3 = vcmp.lt.s32.totalorder %v363_v58, %v367_v62 }
  0x7d   : > { %vm369_vm4 = vcmp.lt.s32.totalorder %v364_v59, %v367_v62  ;;  %vm370_vm5 = vcmp.lt.s32.totalorder %v365_v60, %v367_v62 }
  0x82   : > { %v660_v34 = vpop.eup %659 }
  0x83   : > { %v340_v36 = vadd.f32 1.0, %v660_v34  ;;  %v343_v37 = vmul.f32 -0.5, %v660_v34  ;;  %v346_v41 = vand.u32 2147483647, %v660_v34 }
  0x85   : > { %661 = vlog2.f32 %v340_v36  ;;  %v344_v40 = vadd.f32 1.0, %v343_v37  ;;  %vm347_vm2 = vcmp.lt.f32.partialorder %v346_v41, 0.0004427343 }
  0x87   : > { %v345_v46 = vmul.f32 %v660_v34, %v344_v40 }
  0x8b   : > { %v662_v47 = vpop.eup %661 }
  0x8c   : > { %v342_v50 = vmul.f32 0.6931472, %v662_v47 }
  0x8e   : > { %v348_v55 = vsel %vm347_vm2, %v345_v46, %v342_v50 }
  0x8f   : > { %v351_v57 = vadd.f32 %v350_v49, %v348_v55 }
  0x91   : > { %v352_v61 = vmul.f32 %v351_v57, %v333_v54 }
  0x93   : > { %v353_v63 = vadd.f32 %v352_v61, %v335_v56 }
  0x95   : > { %v372_v0 = vperm.slane %v353_v63, 0  ;;  %v373_v2 = vperm.slane %v353_v63, 1  ;;  %v374_v3 = vperm.slane %v353_v63, 2 }
  0x97   : > { %v378_v4 = vsel %vm368_vm3, %v372_v0, 0.0  ;;  %v379_v5 = vsel %vm369_vm4, %v373_v2, 0.0  ;;  %v380_v6 = vsel %vm370_vm5, %v374_v3, 0.0 }
  0x98   : > { %v384_v7 = vrot.slane %v379_v5, 7  ;;  %v385_v8 = vrot.slane %v380_v6, 6 }
  0x9a   : > { %v387_v10 = vsel %vm386_vm6, %v378_v4, %v384_v7 }
  0x9b   : > { %v389_v11 = vsel %vm388_vm7, %v387_v10, %v385_v8 }
  0x9c   : > { %v391_v12 = vadd.f32 %v389_v11, %v366_v9 }
  0x9e   : > { %396 = vst.msk [vmem:[#allocation2] sm:$0x7] %vm1035_vm0, %v391_v12 }
  0x9f PF: > { %s551_s21 = smul.u32 3, %s856_s17  ;;  %s419_s27 = sshll.u32 %s270_s23, 4  ;;  %s420_s27 = int_to_ptr.vmem [resolvable:$true] %s419_s27 }
  0xa0   : > { %s407_s5 = scalar_lea.sflag [#allocation5], %s268_s6  ;;  %s773_s2 = scalar_lea.hbm %s1110_s3, 6 }
  0xa1   : > { %s417_s30 = scalar_lea.hbm %s1110_s3, %s551_s21 }
  0xa2   : > { %s421_s11 = sshll.u32 %s417_s30, 4  ;;  %s422_s11 = int_to_ptr.hbm [resolvable:$true] %s421_s11 }
  0xa3   : > { %s767_s9 = sshra.s32 %s422_s11, 4  ;;  %s768_s9 = int_to_ptr.hbm [resolvable:$true] %s767_s9 }
  0xa4   : > { %s769_s26 = scalar_lea.hbm %s768_s9, 3  ;;  %p774_p5 = scmp.lt.s32.totalorder %s768_s9, %s1110_s3 }
  0xa5   : > { %v400_v13 = vld [vmem:[#allocation2] sm:$0x7]  ;;  %p770_p11 = scmp.ne.s32.totalorder %s768_s9, %s769_s26  ;;  %p775_p6 = scmp.lt.s32.totalorder %s773_s2, %s769_s26 }
  0xa6   : > { %405 = vst.msk [vmem:[%s270_s23] sm:$0x7] %vm1035_vm0, %v400_v13 }
  0xa7   : > { %p771_p12 = pnand %p770_p11, %p946_p7  ;;  %p776_p8 = por %p775_p6, %p774_p5 }
  0xa9   : > { %p772_p0 = pneg %p771_p12 }
  0xab   : > { %p777_p10 = pnand %p776_p8, %p772_p0 }
  0xad   : > { %780 = shalt.err (!%p777_p10)
}
  0xae   : > { %560 = dma.vmem_to_hbm [thread:$0]  (%p946_p7), %s420_s27, 48, %s422_s11, %s407_s5  }
  0xaf PF: > { %s433_s6 = sand.u32 1, %s836_s12   ;;  %p1122_p13 = scmp.ge.s32.totalorder %s864_s19, 2 }
  0xb0   : > { %s434_s10 = scalar_lea.sflag [#allocation5], %s433_s6 }
  0xb1   : > { %p574_p2 = pnand %p1122_p13, %p951_p9 }
  0xb3   : > { %p575_p4 = pneg %p574_p2 }
  0xb5   : > { %830 = dma.done.wait (%p575_p4), %s434_s10, 48  }
  0xb6   : > { %832 = vsyncadd (%p575_p4), %s434_s10, 4294967248  ;;  %s22_s19 = sadd.s32 1, %s864_s19   ;;  %s1123_s24 = sld [smem:[#allocation14_spill]] }
  0xb7   : > { %p19_p3 = scmp.ge.s32.totalorder %s22_s19, 4   ;;  %s1124_s12 = smov %s840_s13 }
  0xb8   : > { %s1125_s13 = smov %s844_s14  ;;  %s1126_s14 = smov %s979_s7 }
  0xb9   : > { %s1127_s15 = smov %s852_s16  ;;  %s1097_s16 = smov 0  }
  0xba   : > { %s1128_s17 = smov %s860_s18  ;;  %21 = sbr.rel (!%p19_p3) target bundleno = 11 (0xb), region = 110 }
  0xbc   : > { %s1129_s18 = smov %s1123_s24 }
  0xbf   :  { %440 = vsyncpa [#allocation4], 1 }
  0xc0   :  { %442 = vsyncpa [#allocation4 + $0x1], 1 }
  0xc1   :  { %443 = vsyncpa [#allocation7], 1 }
  0xc2   :  { %445 = vsyncpa [#allocation7 + $0x1], 1 }
  0xc3   :  { %446 = vsyncpa [#allocation5], 1 }
  0xc4   :  { %448 = vsyncpa [#allocation5 + $0x1], 1 }

</bundles_post_ra>
